<compile_context>
chip_gen: v7x
topology: tpu7x:2x2x1
jax: 0.10.0
libtpu: 0.0.40
codegen_flags: <defaults>
</compile_context>

<pallas_src>
import functools

import jax
import jax.numpy as jnp
from jax import lax
from jax.experimental import pallas as pl
from jax.experimental.pallas import tpu as pltpu

_LANE = 128
_SUBLANE = 8
_TARGET_X_TILE_BYTES = 2 * 1024 * 1024   # ~2 MiB per x block (~4 MiB double-buffered)


# ----------------------------------------------------------------------------- kernels
def _mean_pool_masked_kernel(x_ref, m_ref, o_ref, den_ref, *, seq_len, seq_tile):
    # x_ref: (tb, ts, th); m_ref: (tb, ts); o_ref: (tb, th) f32 (resident acc);
    # den_ref: (tb, 1) f32 scratch.  Grid = (batch, hidden, seq) with seq last.
    s_idx = pl.program_id(2)

    @pl.when(s_idx == 0)
    def _():
        o_ref[...] = jnp.zeros_like(o_ref)
        den_ref[...] = jnp.zeros_like(den_ref)

    x = x_ref[...]
    m = m_ref[...]

    if seq_len % seq_tile != 0:
        # Last seq block reads past S: zero both x and the mask there (garbage
        # may be NaN/Inf; 0 * NaN = NaN, so a zero mask alone is not enough).
        base = s_idx * seq_tile
        valid2 = (base + lax.broadcasted_iota(jnp.int32, m.shape, 1)) < seq_len
        valid3 = (base + lax.broadcasted_iota(jnp.int32, x.shape, 1)) < seq_len
        m = jnp.where(valid2, m, jnp.zeros_like(m))
        x = jnp.where(valid3, x, jnp.zeros_like(x))

    prec = lax.Precision.HIGHEST if x.dtype == jnp.float32 else lax.Precision.DEFAULT
    m_x = m.astype(x.dtype)[:, None, :]                      # (tb, 1, ts)
    # MXU: per-batch (1, ts) @ (ts, th) with f32 accumulation.
    num = jnp.einsum("bqs,bsh->bqh", m_x, x,
                     preferred_element_type=jnp.float32, precision=prec)
    o_ref[...] += num[:, 0, :]
    den_ref[...] += jnp.sum(m.astype(jnp.float32), axis=1, keepdims=True)

    @pl.when(s_idx == pl.num_programs(2) - 1)
    def _():
        denom = jnp.maximum(den_ref[...], 1e-9)
        o_ref[...] = o_ref[...] * pl.reciprocal(denom, approx=False)  # exact divide


def _mean_pool_nomask_kernel(x_ref, o_ref, *, seq_len, seq_tile, inv_n):
    # x_ref: (tb, ts, th); o_ref: (tb, th) f32 (resident accumulator).
    s_idx = pl.program_id(2)

    @pl.when(s_idx == 0)
    def _():
        o_ref[...] = jnp.zeros_like(o_ref)

    x = x_ref[...]
    if seq_len % seq_tile != 0:
        base = s_idx * seq_tile
        valid3 = (base + lax.broadcasted_iota(jnp.int32, x.shape, 1)) < seq_len
        x = jnp.where(valid3, x, jnp.zeros_like(x))

    prec = lax.Precision.HIGHEST if x.dtype == jnp.float32 else lax.Precision.DEFAULT
    ones = jnp.ones((x.shape[0], 1, x.shape[1]), x.dtype)     # in-kernel, no HBM traffic
    num = jnp.einsum("bqs,bsh->bqh", ones, x,
                     preferred_element_type=jnp.float32, precision=prec)
    o_ref[...] += num[:, 0, :]

    @pl.when(s_idx == pl.num_programs(2) - 1)
    def _():
        o_ref[...] = o_ref[...] * inv_n


# ----------------------------------------------------------------------------- tiling
def _round_up(x, m):
    return (x + m - 1) // m * m


def _choose_tiles(B, S, H, itemsize, vmem_limit_bytes):
    """Pick (batch, seq, hidden) tiles.  Kernel is HBM-bound: aim for ~2 MiB x
    blocks (amortize per-step overhead / reach roofline) while the real
    double-buffered footprint stays well inside the VMEM limit (v7x: 64 MiB)."""
    x_budget = (vmem_limit_bytes * 3) // 5           # share reserved for x double buffer
    target = min(_TARGET_X_TILE_BYTES, x_budget // 2)

    # batch tile: full B if small, else multiples of 8 (keep >= 2 batch steps
    # so megacore / both TensorCores have work).
    if B <= _SUBLANE:
        tb = B
    else:
        tb = _SUBLANE
        while (tb + _SUBLANE) * 2 <= B and (tb + _SUBLANE) * S * H * itemsize <= target:
            tb += _SUBLANE

    # hidden tile: full H unless even a minimum-seq block would blow the budget.
    th = H
    min_ts = min(S, _LANE)
    if H > _LANE and 2 * tb * min_ts * H * itemsize > x_budget:
        th = (x_budget // (2 * tb * min_ts * itemsize)) // _LANE * _LANE
        th = max(_LANE, min(th, (H // _LANE) * _LANE))

    # sequence tile: full S if it fits the target, else a multiple of 128.
    blk_bytes = tb * th * itemsize                   # bytes per sequence position
    if S * blk_bytes <= target or S <= _LANE:
        ts = S
    else:
        ts = max(1, target // blk_bytes) // _LANE * _LANE
        ts = max(_LANE, ts)
        if ts >= S:
            ts = S
    return tb, ts, th


def _sanitize_batch_tile(tb, B):
    tb = max(1, int(tb))
    if tb >= B or B <= _SUBLANE:
        return B
    tb = _round_up(tb, _SUBLANE)
    return B if tb >= B else tb


def _sanitize_lane_tile(t, full):
    t = max(1, int(t))
    if t >= full:
        return full
    t = max(_LANE, _round_up(t, _LANE))
    return full if t >= full else t


# ----------------------------------------------------------------------------- wrapper
def mean_pooler(inputs, mask=None, *, batch_tile=None, seq_tile=None,
                hidden_tile=None, vmem_limit_bytes=48 * 1024 * 1024):
    """Pallas equivalent of MeanPooler.forward.

    inputs: (B, S, H) float array
    mask:   optional (B, S) array (float / bool / int)
    returns (None, pooled) with pooled: (B, H) float32
    """
    B, S, H = inputs.shape
    itemsize = jnp.dtype(inputs.dtype).itemsize

    tb, ts, th = _choose_tiles(B, S, H, itemsize, vmem_limit_bytes)
    if batch_tile is not None:
        tb = _sanitize_batch_tile(batch_tile, B)
    if seq_tile is not None:
        ts = _sanitize_lane_tile(seq_tile, S)
    if hidden_tile is not None:
        th = _sanitize_lane_tile(hidden_tile, H)

    grid = (pl.cdiv(B, tb), pl.cdiv(H, th), pl.cdiv(S, ts))
    x_spec = pl.BlockSpec((tb, ts, th), lambda b, h, s: (b, s, h))
    o_spec = pl.BlockSpec((tb, th), lambda b, h, s: (b, h))
    cparams = pltpu.CompilerParams(
        dimension_semantics=("parallel", "parallel", "arbitrary"),
        vmem_limit_bytes=vmem_limit_bytes,
    )
    out_shape = jax.ShapeDtypeStruct((B, H), jnp.float32)

    if mask is None:
        kernel = functools.partial(_mean_pool_nomask_kernel,
                                   seq_len=S, seq_tile=ts, inv_n=float(1.0 / S))
        pooled = pl.pallas_call(
            kernel,
            out_shape=out_shape,
            grid=grid,
            in_specs=[x_spec],
            out_specs=o_spec,
            compiler_params=cparams,
        )(inputs)
    else:
        m = mask
        if not jnp.issubdtype(m.dtype, jnp.floating):
            # bool/int masks: one tiny normalization pass (B*S*4 bytes, negligible
            # vs. x traffic) so the (tb, ts) block uses the plain 32-bit tiling.
            m = m.astype(jnp.float32)
        m_spec = pl.BlockSpec((tb, ts), lambda b, h, s: (b, s))
        kernel = functools.partial(_mean_pool_masked_kernel, seq_len=S, seq_tile=ts)
        pooled = pl.pallas_call(
            kernel,
            out_shape=out_shape,
            grid=grid,
            in_specs=[x_spec, m_spec],
            out_specs=o_spec,
            scratch_shapes=[pltpu.VMEM((tb, 1), jnp.float32)],
            compiler_params=cparams,
        )(inputs, m)

    return (None, pooled)


# ----------------------------------------------------------------------------- demo / checks
if __name__ == "__main__":
    key = jax.random.PRNGKey(0)

    def ref_masked(x, m):
        m3 = m[..., None].astype(jnp.float32)
        xf = x.astype(jnp.float32)
        return (xf * m3).sum(1) / jnp.maximum(m3.sum(1), 1e-9)

    # 1) tiny shape matching the module's (batch, seq, hidden) convention
    B, S, H = 2, 8, 32
    k1, k2, key = jax.random.split(key, 3)
    x = jax.random.normal(k1, (B, S, H), jnp.float32)
    m = (jax.random.uniform(k2, (B, S)) > 0.3).astype(jnp.float32)
    m = m.at[:, 0].set(1.0)                     # at least one valid token per row
    _, p = mean_pooler(x, m)
    jax.block_until_ready(p)
    assert jnp.allclose(p, ref_masked(x, m), atol=1e-5, rtol=1e-5)
    _, pn = mean_pooler(x, None)
    jax.block_until_ready(pn)
    assert jnp.allclose(pn, x.mean(1), atol=1e-5, rtol=1e-5)

    # 2) seq tiling + in-kernel seq-tail masking + batch tail (B % 8 != 0)
    B2, S2, H2 = 10, 192, 32
    k3, k4, key = jax.random.split(key, 3)
    x2 = jax.random.normal(k3, (B2, S2, H2), jnp.float32)
    m2 = (jax.random.uniform(k4, (B2, S2)) > 0.5).astype(jnp.float32)
    m2 = m2.at[:, 0].set(1.0)
    _, p2 = mean_pooler(x2, m2, seq_tile=128)
    jax.block_until_ready(p2)
    assert jnp.allclose(p2, ref_masked(x2, m2), atol=1e-4, rtol=1e-4)
    _, p2n = mean_pooler(x2, None, seq_tile=128)
    jax.block_until_ready(p2n)
    assert jnp.allclose(p2n, x2.mean(1), atol=1e-4, rtol=1e-4)

    # 3) hidden-axis tiling path
    B3, S3, H3 = 2, 16, 256
    k5, k6, key = jax.random.split(key, 3)
    x3 = jax.random.normal(k5, (B3, S3, H3), jnp.float32)
    mk3 = (jax.random.uniform(k6, (B3, S3)) > 0.4).astype(jnp.float32)
    mk3 = mk3.at[:, 0].set(1.0)
    _, p3 = mean_pooler(x3, mk3, hidden_tile=128)
    jax.block_until_ready(p3)
    assert jnp.allclose(p3, ref_masked(x3, mk3), atol=1e-4, rtol=1e-4)

    # 4) bf16 inputs + bool mask (bf16 MXU path, in-kernel mask upcast)
    k7, k8, key = jax.random.split(key, 3)
    x4 = jax.random.normal(k7, (2, 8, 32), jnp.float32).astype(jnp.bfloat16)
    m4 = jax.random.uniform(k8, (2, 8)) > 0.3
    m4 = m4.at[:, 0].set(True)
    _, p4 = mean_pooler(x4, m4)
    jax.block_until_ready(p4)
    assert jnp.allclose(p4, ref_masked(x4, m4), atol=1e-2, rtol=1e-2)

    print("KERNEL_OK")
</pallas_src>

<mosaic_0001>
module attributes {stable_mosaic.version = 11 : i64} {
  func.func @_mean_pool_masked_kernel(%arg0: i32, %arg1: i32, %arg2: i32, %arg3: memref<2x8x32xf32, #tpu.memory_space<vmem>>, %arg4: memref<2x8xf32, #tpu.memory_space<vmem>>, %arg5: memref<2x32xf32, #tpu.memory_space<vmem>>, %arg6: memref<2x1xf32, #tpu.memory_space<vmem>>) attributes {dimension_semantics = [#tpu.dimension_semantics<parallel>, #tpu.dimension_semantics<parallel>, #tpu.dimension_semantics<arbitrary>], iteration_bounds = array<i64: 1, 1, 1>, scalar_prefetch = 0 : i64, scratch_operands = 1 : i64, tpu.core_type = #tpu.core_type<tc>, window_params = [{transform_indices = @transform_0, window_bounds = array<i64: 2, 8, 32>}, {transform_indices = @transform_1, window_bounds = array<i64: 2, 8>}, {transform_indices = @transform_2, window_bounds = array<i64: 2, 32>}]} {
    %c0_i32 = arith.constant 0 : i32
    %0 = arith.cmpi eq, %arg2, %c0_i32 : i32
    %1 = arith.extui %0 : i1 to i32
    %c0_i32_0 = arith.constant 0 : i32
    %2 = arith.cmpi ne, %1, %c0_i32_0 : i32
    scf.if %2 {
      %cst_16 = arith.constant 0.000000e+00 : f32
      %19 = vector.broadcast %cst_16 : f32 to vector<2x32xf32>
      %c0_17 = arith.constant 0 : index
      %c0_18 = arith.constant 0 : index
      %20 = vector.load %arg5[%c0_17, %c0_18] : memref<2x32xf32, #tpu.memory_space<vmem>>, vector<2x32xf32>
      tpu.vector_store %arg5[%c0_17, %c0_18], %19 {strides = array<i32>} : memref<2x32xf32, #tpu.memory_space<vmem>>, vector<2x32xf32>,
      %cst_19 = arith.constant 0.000000e+00 : f32
      %21 = vector.broadcast %cst_19 : f32 to vector<2x1xf32>
      %c0_20 = arith.constant 0 : index
      %c0_21 = arith.constant 0 : index
      %22 = vector.load %arg6[%c0_20, %c0_21] : memref<2x1xf32, #tpu.memory_space<vmem>>, vector<2x1xf32>
      tpu.vector_store %arg6[%c0_20, %c0_21], %21 {strides = array<i32>} : memref<2x1xf32, #tpu.memory_space<vmem>>, vector<2x1xf32>,
    } else {
    }
    %c0 = arith.constant 0 : index
    %c0_1 = arith.constant 0 : index
    %c0_2 = arith.constant 0 : index
    %3 = vector.load %arg3[%c0, %c0_1, %c0_2] : memref<2x8x32xf32, #tpu.memory_space<vmem>>, vector<2x8x32xf32>
    %c0_3 = arith.constant 0 : index
    %c0_4 = arith.constant 0 : index
    %4 = vector.load %arg4[%c0_3, %c0_4] : memref<2x8xf32, #tpu.memory_space<vmem>>, vector<2x8xf32>
    %5 = vector.shape_cast %4 : vector<2x8xf32> to vector<2x1x8xf32>
    "tpu.trace_start"() <{level = 10 : i32, message = "bqs,bsh->bqh"}> : () -> ()
    %cst = arith.constant dense<0.000000e+00> : vector<2x1x32xf32>
    %6 = tpu.matmul %5, %3, %cst {dimension_numbers = #tpu.dot_dimension_numbers<[2], [1], [1], [2], [0, 0, 0, 1, 1, 2], [0], [0]>, precision = #tpu.contract_precision<fp32>} : vector<2x1x8xf32>, vector<2x8x32xf32>, vector<2x1x32xf32> -> vector<2x1x32xf32>
    "tpu.trace_stop"() : () -> ()
    %c0_5 = arith.constant 0 : index
    %c0_6 = arith.constant 0 : index
    %7 = vector.load %arg5[%c0_5, %c0_6] : memref<2x32xf32, #tpu.memory_space<vmem>>, vector<2x32xf32>
    %8 = vector.shape_cast %6 : vector<2x1x32xf32> to vector<2x32xf32>
    %9 = arith.addf %7, %8 : vector<2x32xf32>
    %c0_7 = arith.constant 0 : index
    %c0_8 = arith.constant 0 : index
    %10 = vector.load %arg5[%c0_7, %c0_8] : memref<2x32xf32, #tpu.memory_space<vmem>>, vector<2x32xf32>
    tpu.vector_store %arg5[%c0_7, %c0_8], %9 {strides = array<i32>} : memref<2x32xf32, #tpu.memory_space<vmem>>, vector<2x32xf32>,
    %c0_9 = arith.constant 0 : index
    %c0_10 = arith.constant 0 : index
    %11 = vector.load %arg6[%c0_9, %c0_10] : memref<2x1xf32, #tpu.memory_space<vmem>>, vector<2x1xf32>
    %cst_11 = arith.constant dense<0.000000e+00> : vector<2xf32>
    %12 = vector.multi_reduction <add>, %4, %cst_11 [1] : vector<2x8xf32> to vector<2xf32>
    %13 = vector.shape_cast %12 : vector<2xf32> to vector<2x1xf32>
    %14 = arith.addf %11, %13 : vector<2x1xf32>
    %c0_12 = arith.constant 0 : index
    %c0_13 = arith.constant 0 : index
    %15 = vector.load %arg6[%c0_12, %c0_13] : memref<2x1xf32, #tpu.memory_space<vmem>>, vector<2x1xf32>
    tpu.vector_store %arg6[%c0_12, %c0_13], %14 {strides = array<i32>} : memref<2x1xf32, #tpu.memory_space<vmem>>, vector<2x1xf32>,
    %c0_i32_14 = arith.constant 0 : i32
    %16 = arith.cmpi eq, %arg2, %c0_i32_14 : i32
    %17 = arith.extui %16 : i1 to i32
    %c0_i32_15 = arith.constant 0 : i32
    %18 = arith.cmpi ne, %17, %c0_i32_15 : i32
    scf.if %18 {
      %c0_16 = arith.constant 0 : index
      %c0_17 = arith.constant 0 : index
      %19 = vector.load %arg6[%c0_16, %c0_17] : memref<2x1xf32, #tpu.memory_space<vmem>>, vector<2x1xf32>
      %cst_18 = arith.constant 9.99999971E-10 : f32
      %20 = vector.broadcast %cst_18 : f32 to vector<2x1xf32>
      %21 = arith.maximumf %19, %20 : vector<2x1xf32>
      %c0_19 = arith.constant 0 : index
      %c0_20 = arith.constant 0 : index
      %22 = vector.load %arg5[%c0_19, %c0_20] : memref<2x32xf32, #tpu.memory_space<vmem>>, vector<2x32xf32>
      %23 = tpu.reciprocal %21 : vector<2x1xf32> -> vector<2x1xf32>
      %24 = vector.broadcast %23 : vector<2x1xf32> to vector<2x32xf32>
      %25 = arith.mulf %22, %24 : vector<2x32xf32>
      %c0_21 = arith.constant 0 : index
      %c0_22 = arith.constant 0 : index
      %26 = vector.load %arg5[%c0_21, %c0_22] : memref<2x32xf32, #tpu.memory_space<vmem>>, vector<2x32xf32>
      tpu.vector_store %arg5[%c0_21, %c0_22], %25 {strides = array<i32>} : memref<2x32xf32, #tpu.memory_space<vmem>>, vector<2x32xf32>,
    } else {
    }
    return
  }
  func.func @transform_0(%arg0: i32, %arg1: i32, %arg2: i32) -> (i32, i32, i32) {
    %c0_i32 = arith.constant 0 : i32
    return %arg0, %arg2, %arg1 : i32, i32, i32
  }
  func.func @transform_1(%arg0: i32, %arg1: i32, %arg2: i32) -> (i32, i32) {
    %c0_i32 = arith.constant 0 : i32
    return %arg0, %arg2 : i32, i32
  }
  func.func @transform_2(%arg0: i32, %arg1: i32, %arg2: i32) -> (i32, i32) {
    %c0_i32 = arith.constant 0 : i32
    return %arg0, %arg1 : i32, i32
  }
}

</mosaic_0001>

<bundles_post_ra>
// kernel: tpu_custom_call.1
= control target key start
LH: loop header
LB: loop body
LE: loop exit
PB: predicated region body
PF: predicated region fallthrough
CT: control target
= control target key end

     0   :  { %7 = vsyncpa [#allocation4], 0  ;;  %s1272_s0 = inlined_call_operand.hbm [shape: f32[2,8,32], index: 0, kind: input, shape index: {}]   ;;  %s1273_s1 = inlined_call_operand.vmem [shape: f32[2,8], index: 1, kind: input, shape index: {}]   ;;  %s1274_s2 = inlined_call_operand.hbm [shape: f32[2,32], index: 2, kind: output, shape index: {}]  }
   0x1   :  { %8 = vsyncpa [#allocation5], 0  ;;  %s1167_s9 = smov [#allocation3]   ;;  %s1119_s13 = scalar_lea.hbm %s1272_s0, 256 }
   0x2   :  { %s14_s10 = sshll.u32 %s1167_s9, 4  ;;  %p1120_p0 = scmp.ne.s32.totalorder %s1272_s0, %s1119_s13  ;;  %s15_s10 = int_to_ptr.vmem [resolvable:$true] %s14_s10 }
   0x3   :  { %p1123_p1 = scmp.lt.u32.totalorder %s1119_s13, %s1272_s0 }
   0x5   :  { %p1125_p2 = pnand %p1123_p1, %p1120_p0 }
   0x7   :  { %1128 = shalt.err (!%p1125_p2)
}
   0x8   :  { %s1129_s18 = scalar_lea.vmem %s15_s10, 256  ;;  %p1134_p4 = scmp.lt.s32.totalorder %s15_s10, %s15_s10 }
   0x9   :  { %p1130_p3 = scmp.ne.s32.totalorder %s15_s10, %s1129_s18  ;;  %p1135_p5 = scmp.lt.s32.totalorder %s1129_s18, %s1129_s18 }
   0xb   :  { %p1136_p6 = por %p1135_p5, %p1134_p4 }
   0xd   :  { %p1137_p7 = pnand %p1136_p6, %p1130_p3 }
   0xf   :  { %1140 = shalt.err (!%p1137_p7)
}
  0x10   :  { %s1168_s19 = smov 128   ;;  %s1169_s20 = smov 8  }
  0x11   :  { %20 = dma.hbm_to_vmem [thread:$0]  %s1272_s0, 256, %s15_s10, [#allocation4], %s1168_s19, %s1168_s19, %s1169_s20  }
  0x12   :  { %1163 = dma.done.wait [#allocation4], 256  }
  0x13   :  { %1164 = vsyncadd [#allocation4], 4294967040  ;;  %v41_v0 = vlaneseq  ;;  %v1170_v1 = vmov 1966171168   ;;  %vm32_vm0 = vcmask 1024   ;;  %v1171_v4 = vmov 0.0  }
  0x14   :  { %v39_v2 = vunpack.c.l.s4 %v1170_v1  ;;  %1028 = vmatprep.subr.mxu0 %v1171_v4  ;;  %vm1172_vm1 = vmmov 0   ;;  %33 = vst.msk [vmem:[#allocation2] sm:$0x3] %vm32_vm0, %v1171_v4  ;;  %1058 = vmatprep.subr.mxu1 %v1171_v4  ;;  %vm968_vm2 = vcmask 58368   ;;  %v36_v7 = vld [vmem:[%s1273_s1] sm:$0x3] }
  0x15   :  { %v42_v3 = vshrl.u32 %v41_v0, 7  ;;  %1030 = vmatprep.mubr.msk.f32.mxu0 %vm1172_vm1, %v1171_v4  ;;  %1060 = vmatprep.mubr.msk.f32.mxu1 %vm1172_vm1, %v1171_v4  ;;  %v34_v8 = vld [vmem:[#allocation3] sm:$0xff]  ;;  %v35_v9 = vld [vmem:[#allocation3 + $0x8] sm:$0xff]  ;;  %v969_v10 = vsel %vm968_vm2, %v36_v7, 0.0  ;;  %vm60_vm3 = vcmask 64512   ;;  %v1173_v37 = vmov 0  }
  0x16   :  { %v40_v5 = vunpack.c.0.s8 %v39_v2  ;;  %v1213_v12 = vand.u32 4294901760, %v34_v8  ;;  %v1215_v13 = vand.u32 4294901760, %v35_v9  ;;  %970 = vadd.xlane.f32.xlu0 %v969_v10  ;;  %vm30_vm4 = vcmask 254976   ;;  %s1174_s1 = smov [#allocation6]  }
  0x17   :  { %1116 = vset.pattern.permute.xlu0 %v1173_v37  ;;  %31 = vst.msk [vmem:[#allocation6] sm:$0x3] %vm30_vm4, %v1171_v4  ;;  %vm961_vm5 = vcmask 1041409   ;;  %s995_s24 = sshll.u32 %s1174_s1, 4  ;;  %s996_s24 = int_to_ptr.vmem [resolvable:$true] %s995_s24 }
  0x18   :  { %v43_v6 = vsub.s32 %v40_v5, %v42_v3  ;;  %1029 = vmatpush3.msra.mxu0 %v1213_v12  ;;  %v141_v16 = vsub.f32 %v34_v8, %v1213_v12  ;;  %1059 = vmatpush3.msra.mxu1 %v1215_v13  ;;  %v589_v17 = vsub.f32 %v35_v9, %v1215_v13  ;;  %s1141_s25 = scalar_lea.vmem %s996_s24, 32  ;;  %p1146_p9 = scmp.lt.s32.totalorder %s996_s24, %s996_s24 }
  0x19   :  { %1033 = vmatprep.subr.mxu0 %v1171_v4  ;;  %1063 = vmatprep.subr.mxu1 %v1171_v4  ;;  %p1142_p8 = scmp.ne.s32.totalorder %s996_s24, %s1141_s25  ;;  %p1147_p10 = scmp.lt.s32.totalorder %s1141_s25, %s1141_s25 }
  0x1a   :  { %v44_v11 = vrot.slane %v36_v7, %v43_v6  ;;  %v142_v20 = vand.u32 4294901760, %v141_v16  ;;  %v590_v23 = vand.u32 4294901760, %v589_v17 }
  0x1b   :  { %v967_v38 = vld [vmem:[#allocation2] sm:$0x3]  ;;  %p1148_p11 = por %p1147_p10, %p1146_p9 }
  0x1c   :  { %v45_v14 = vcombine.high %v44_v11, %v44_v11  ;;  %v52_v15 = vrot.slane %v44_v11, %v43_v6  ;;  %v143_v26 = vsub.f32 %v141_v16, %v142_v20  ;;  %v591_v29 = vsub.f32 %v589_v17, %v590_v23 }
  0x1d   :  { %p1149_p12 = pnand %p1148_p11, %p1142_p8 }
  0x1e   :  { %v59_v18 = vrot.slane %v45_v14, %v43_v6  ;;  %v61_v19 = vsel %vm60_vm3, %v52_v15, 0  ;;  %v144_v32 = vand.u32 4294901760, %v143_v26  ;;  %v592_v35 = vand.u32 4294901760, %v591_v29  ;;  %v957_v47 = vld [vmem:[#allocation6] sm:$0x3] }
  0x1f   :  { %v129_v21 = vand.u32 4294901760, %v61_v19 }
  0x20   :  { %v509_v22 = vsel %vm60_vm3, %v59_v18, 0 }
  0x21   :  { %v130_v24 = vsub.f32 %v61_v19, %v129_v21  ;;  %v577_v25 = vand.u32 4294901760, %v509_v22 }
  0x23   :  { %v578_v27 = vsub.f32 %v509_v22, %v577_v25  ;;  %v131_v28 = vand.u32 4294901760, %v130_v24 }
  0x25   :  { %v132_v30 = vsub.f32 %v130_v24, %v131_v28  ;;  %v579_v31 = vand.u32 4294901760, %v578_v27 }
  0x27   :  { %v133_v33 = vand.u32 4294901760, %v132_v30  ;;  %v580_v34 = vsub.f32 %v578_v27, %v579_v31 }
  0x29   :  { %1031 = vmatmul.mubr.f32.vlgmr.msra.gmra.mrb[0].mxu0 %v133_v33  ;;  %v581_v36 = vand.u32 4294901760, %v580_v34 }
  0x2a   :  { %1034 = vmatpush3.msra.mxu0 %v144_v32  ;;  %1035 = vmatprep.mubr.msk.f32.mxu0 %vm1172_vm1, %v1171_v4 }
  0x2b   :  { %1061 = vmatmul.mubr.f32.vlgmr.msra.gmra.mrb[0].mxu1 %v581_v36  ;;  %1038 = vmatprep.subr.mxu0 %v1171_v4 }
  0x2c   :  { %1064 = vmatpush3.msra.mxu1 %v592_v35  ;;  %1065 = vmatprep.mubr.msk.f32.mxu1 %vm1172_vm1, %v1171_v4 }
  0x2d   :  { %1068 = vmatprep.subr.mxu1 %v1171_v4 }
  0x31   :  { %1036 = vmatmul.mubr.f32.vlgmr.msra.gmra.mrb[0].mxu0 %v129_v21 }
  0x32   :  { %1039 = vmatpush3.msra.mxu0 %v141_v16  ;;  %1040 = vmatprep.mubr.msk.f32.mxu0 %vm1172_vm1, %v1171_v4 }
  0x33   :  { %1066 = vmatmul.mubr.f32.vlgmr.msra.gmra.mrb[0].mxu1 %v577_v25  ;;  %1043 = vmatprep.subr.mxu0 %v1171_v4 }
  0x34   :  { %1069 = vmatpush3.msra.mxu1 %v589_v17  ;;  %1070 = vmatprep.mubr.msk.f32.mxu1 %vm1172_vm1, %v1171_v4 }
  0x35   :  { %1073 = vmatprep.subr.mxu1 %v1171_v4 }
  0x39   :  { %1041 = vmatmul.mubr.f32.vlgmr.msra.gmra.mrb[0].mxu0 %v130_v24 }
  0x3a   :  { %1044 = vmatpush3.msra.mxu0 %v1213_v12  ;;  %1045 = vmatprep.mubr.msk.f32.mxu0 %vm1172_vm1, %v1171_v4 }
  0x3b   :  { %1071 = vmatmul.mubr.f32.vlgmr.msra.gmra.mrb[0].mxu1 %v578_v27  ;;  %1048 = vmatprep.subr.mxu0 %v1171_v4 }
  0x3c   :  { %1074 = vmatpush3.msra.mxu1 %v1215_v13  ;;  %1075 = vmatprep.mubr.msk.f32.mxu1 %vm1172_vm1, %v1171_v4 }
  0x3d   :  { %1078 = vmatprep.subr.mxu1 %v1171_v4 }
  0x41   :  { %1046 = vmatmul.mubr.f32.vlgmr.msra.gmra.mrb[0].mxu0 %v131_v28 }
  0x42   :  { %1049 = vmatpush3.msra.mxu0 %v142_v20  ;;  %1050 = vmatprep.mubr.msk.f32.mxu0 %vm1172_vm1, %v1171_v4 }
  0x43   :  { %1076 = vmatmul.mubr.f32.vlgmr.msra.gmra.mrb[0].mxu1 %v579_v31  ;;  %1053 = vmatprep.subr.mxu0 %v1171_v4 }
  0x44   :  { %1079 = vmatpush3.msra.mxu1 %v590_v23  ;;  %1080 = vmatprep.mubr.msk.f32.mxu1 %vm1172_vm1, %v1171_v4 }
  0x45   :  { %1083 = vmatprep.subr.mxu1 %v1171_v4 }
  0x49   :  { %1051 = vmatmul.mubr.f32.vlgmr.msra.gmra.mrb[0].mxu0 %v129_v21 }
  0x4a   :  { %1054 = vmatpush3.msra.mxu0 %v1213_v12  ;;  %1055 = vmatprep.mubr.msk.f32.mxu0 %vm1172_vm1, %v1171_v4 }
  0x4b   :  { %1081 = vmatmul.mubr.f32.vlgmr.msra.gmra.mrb[0].mxu1 %v577_v25 }
  0x4c   :  { %1084 = vmatpush3.msra.mxu1 %v1215_v13  ;;  %1085 = vmatprep.mubr.msk.f32.mxu1 %vm1172_vm1, %v1171_v4 }
  0x51   :  { %1056 = vmatmul.mubr.f32.vlgmr.msra.gmra.mrb[0].mxu0 %v129_v21 }
  0x53   :  { %1086 = vmatmul.mubr.f32.vlgmr.msra.gmra.mrb[0].mxu1 %v577_v25 }
  0xa3   :  { %v971_v39 = vpop.xlane.xlu0 %970 }
  0xa4   :  { %v972_v40 = vadd.f32 %v971_v39, %v967_v38 }
  0xa6   :  { %974 = vst.msk [vmem:[#allocation2] sm:$0x3] %vm32_vm0, %v972_v40 }
  0xad   :  { %v978_v41 = vld [vmem:[#allocation2] sm:$0x3] }
  0xae   :  { %v979_v42 = vmax.f32 %v978_v41, 1e-09 }
  0xb0   :  { %1117 = vrcp.f32 %v979_v42 }
  0xba   :  { %v1118_v43 = vpop.eup %1117 }
  0xbb   :  { %984 = vperm.xlu0 %1116, %v1118_v43  }
 0x124   :  { %v505_v44 = vpop.f32.mrb[0].mxu0 }
 0x125   :  { %v1057_v45 = vpop.f32.mrb[1].mxu0 }
 0x126   :  { %v953_v46 = vpop.f32.mrb[0].mxu1 }
 0x127   :  { %v960_v48 = vrot.slane %v953_v46, 7  ;;  %v1087_v49 = vpop.f32.mrb[1].mxu1 }
 0x129   :  { %v962_v50 = vsel %vm961_vm5, %v960_v48, %v505_v44 }
 0x12a   :  { %v964_v51 = vadd.f32 %v962_v50, %v957_v47 }
 0x12c   :  { %966 = vst.msk [vmem:[#allocation6] sm:$0x3] %vm30_vm4, %v964_v51 }
 0x133   :  { %v980_v53 = vld [vmem:[#allocation6] sm:$0x3] }
 0x13a   :  { %v985_v52 = vpop.permute.xlu0 %984 }
 0x13b   :  { %v987_v54 = vmul.f32 %v985_v52, %v980_v53 }
 0x13d   :  { %988 = vst.msk [vmem:[#allocation6] sm:$0x3] %vm30_vm4, %v987_v54 }
 0x13e   :  { %1152 = shalt.err (!%p1149_p12)
}
 0x13f   :  { %s1153_s28 = scalar_lea.hbm %s1274_s2, 32 }
 0x140   :  { %p1154_p13 = scmp.ne.s32.totalorder %s1274_s2, %s1153_s28  ;;  %p1157_p0 = scmp.lt.u32.totalorder %s1153_s28, %s1274_s2 }
 0x142   :  { %p1159_p1 = pnand %p1157_p0, %p1154_p13 }
 0x144   :  { %1162 = shalt.err (!%p1159_p1)
}
 0x145   :  { %998 = dma.vmem_to_hbm [thread:$0]  %s996_s24, 32, %s1274_s2, [#allocation5]  }
 0x146   :  { %1165 = dma.done.wait [#allocation5], 32  }
 0x147   :  { %1166 = vsyncadd [#allocation5], 4294967264 }
 0x148   :  { %1002 = vsyncpa [#allocation4], 1 }
 0x149   :  { %1003 = vsyncpa [#allocation5], 1 }

</bundles_post_ra>
